<compile_context>
chip_gen: v5e
topology: v5e:2x2
jax: 0.10.0
libtpu: 0.0.40
codegen_flags: <defaults>
</compile_context>

<pallas_src>
import math

import jax
import jax.numpy as jnp
from jax import lax
from jax.experimental import pallas as pl
from jax.experimental.pallas import tpu as pltpu


_INV_SQRT2 = 1.0 / math.sqrt(2.0)


def _round_up(x, m):
    return (x + m - 1) // m * m


def _vmem_capacity_bytes():
    try:
        return int(pltpu.get_tpu_info().vmem_capacity_bytes)
    except Exception:
        return 64 << 20  # conservative fallback (v7x per-TensorCore VMEM)


def _block_spec(shape, index_map, single_buffer=False):
    # Grid-constant operands only need a single VMEM buffer; pipeline_mode /
    # Buffered may be absent on older jax versions, so degrade gracefully.
    if single_buffer and hasattr(pl, "Buffered"):
        try:
            return pl.BlockSpec(shape, index_map, pipeline_mode=pl.Buffered(1))
        except (TypeError, ValueError):
            pass
    return pl.BlockSpec(shape, index_map)


def prepare_feed_forward_params(w1, b1, w2, b2, *, compute_dtype=jnp.bfloat16):
    """One-time weight preparation (call at model load, NOT per forward call).

    w1: (d_hidden, d_model)  PyTorch nn.Linear layout (out, in)
    b1: (d_hidden,)
    w2: (d_model, d_hidden)  PyTorch nn.Linear layout (out, in)
    b2: (d_model,)

    Weights are padded to 128-multiples, cast to `compute_dtype` and stored in
    MXU-native (in, out) layout. Zero padding is exact: padded hidden units see
    b1 = 0 -> GELU(0) = 0 and zero W2 rows, padded d_model columns see zero W1
    rows, so padding contributes exactly 0 to the output.
    """
    d_hidden, d_model = w1.shape
    assert w1.shape == (d_hidden, d_model)
    assert b1.shape == (d_hidden,)
    assert w2.shape == (d_model, d_hidden)
    assert b2.shape == (d_model,)

    Dp = _round_up(d_model, 128)
    Hp = _round_up(d_hidden, 128)

    w1_p = jnp.zeros((Dp, Hp), compute_dtype).at[:d_model, :d_hidden].set(
        jnp.asarray(w1).T.astype(compute_dtype))
    w2_p = jnp.zeros((Hp, Dp), compute_dtype).at[:d_hidden, :d_model].set(
        jnp.asarray(w2).T.astype(compute_dtype))
    b1_p = jnp.zeros((1, Hp), jnp.float32).at[0, :d_hidden].set(
        jnp.asarray(b1).astype(jnp.float32))
    b2_p = jnp.zeros((1, Dp), jnp.float32).at[0, :d_model].set(
        jnp.asarray(b2).astype(jnp.float32))

    return {"w1": w1_p, "b1": b1_p, "w2": w2_p, "b2": b2_p,
            "d_model": d_model, "d_hidden": d_hidden,
            "compute_dtype": jnp.dtype(compute_dtype)}


def _make_ff_kernel(nk, n_split, chunk, compute_dtype):
    """Kernel factory. Grid = (row tiles i [parallel], hidden tiles k [arbitrary]).

    x_ref  : (tm, Dp)   compute-dtype tile of flattened tokens
    w1_ref : (Dp, th)   MXU-native (in, out) slice of W1
    b1_ref : (1, th)    f32
    w2_ref : (th, Dp)   MXU-native (in, out) slice of W2
    b2_ref : (1, Dp)    f32
    o_ref  : (tm, Dp)
    acc    : optional (tm, Dp) f32 accumulator (only when nk > 1)
    """

    def kernel(x_ref, w1_ref, b1_ref, w2_ref, b2_ref, o_ref, *acc):
        x = x_ref[...]
        y = None
        # n_split independent dot -> GELU -> dot chains: lets the scheduler hide
        # the erf-GELU VPU work of one chain under the other chain's MXU time.
        for s in range(n_split):
            lo, hi = s * chunk, (s + 1) * chunk
            h = jnp.dot(x, w1_ref[:, lo:hi], preferred_element_type=jnp.float32)
            h = h + b1_ref[:, lo:hi]
            # exact (erf) GELU — matches torch.nn.GELU() default
            h = 0.5 * h * (1.0 + lax.erf(h * _INV_SQRT2))
            # TODO(synk): dropout omitted — identity in eval mode; a training
            # variant would mask here via pltpu.prng_seed + pltpu.prng_random_bits.
            p = jnp.dot(h.astype(compute_dtype), w2_ref[lo:hi, :],
                        preferred_element_type=jnp.float32)
            y = p if y is None else y + p

        if nk == 1:
            # Weights fully resident: no accumulator scratch needed at all.
            o_ref[...] = (y + b2_ref[...]).astype(o_ref.dtype)
        else:
            acc_ref = acc[0]
            k = pl.program_id(1)

            @pl.when(k == 0)
            def _():
                acc_ref[...] = y          # init-by-assign (no zero-fill pass)

            @pl.when(k > 0)
            def _():
                acc_ref[...] += y

            @pl.when(k == nk - 1)
            def _():
                o_ref[...] = (acc_ref[...] + b2_ref[...]).astype(o_ref.dtype)

    return kernel


def feed_forward_prepared(x, params, *, tm=256, th=None, out_dtype=None,
                          vmem_budget_bytes=None):
    """Fused FeedForward: y = GELU(x @ W1.T + b1) @ W2.T + b2 (dropout = identity).

    x      : (B, S, d_model)
    params : output of prepare_feed_forward_params (padded / cast / pre-transposed)
    tm     : max row tile (rounded to 8 for f32 / 16 for bf16 sublane packing)
    th     : hidden tile; None -> largest divisor of the padded hidden dim that
             fits the generation-aware VMEM budget (weights resident if possible)
    out_dtype: output dtype (default x.dtype); pass bfloat16 to halve writeback
    """
    B, S, d_model = x.shape
    assert d_model == params["d_model"], "x feature dim != prepared weights"
    compute_dtype = params["compute_dtype"]
    w1_p, b1_p, w2_p, b2_p = params["w1"], params["b1"], params["w2"], params["b2"]
    Dp, Hp = w1_p.shape
    d_hidden = params["d_hidden"]

    out_dtype = x.dtype if out_dtype is None else out_dtype
    c_itemsize = jnp.dtype(compute_dtype).itemsize
    o_itemsize = jnp.dtype(out_dtype).itemsize
    M = B * S

    # --- row tiling: align to 16 for sub-32-bit compute (sublane packing) and
    # guarantee >= 2 row tiles whenever possible so v7x's two TensorCores both
    # get work on the "parallel" axis (negligible cost on single-TC chips).
    row_align = 16 if c_itemsize < 4 else 8
    tm = max(row_align, min(tm, _round_up(M, row_align)))
    ni = max(1, math.ceil(M / tm))
    if ni == 1 and M > row_align:
        ni = 2
    tm = _round_up(math.ceil(M / ni), row_align)
    Mp = _round_up(M, tm)
    ni = Mp // tm

    # --- generation-aware VMEM budget and divisor-friendly hidden tile.
    cap = _vmem_capacity_bytes()
    if vmem_budget_bytes is None:
        vmem_budget_bytes = min(int(0.75 * cap), 100 << 20)

    def vmem_estimate(th_, weights_resident):
        wbuf = 1 if weights_resident else 2          # Buffered(1) weights when resident
        b = 2 * tm * Dp * c_itemsize                 # x tile (double buffered)
        b += wbuf * (Dp * th_ + th_ * Dp) * c_itemsize   # W1 + W2 tiles
        b += wbuf * th_ * 4 + Dp * 4                 # b1, b2 (f32)
        b += 2 * tm * Dp * o_itemsize                # out tile (double buffered)
        b += tm * th_ * (4 + c_itemsize)             # h (f32) + cast for dot2
        b += tm * Dp * 4                             # f32 partial / accumulator
        return b

    n_blocks = Hp // 128
    if th is None:
        th = 128
        for nb in range(n_blocks, 0, -1):            # largest divisor that fits
            if n_blocks % nb == 0:
                cand = nb * 128
                if vmem_estimate(cand, cand == Hp) <= vmem_budget_bytes:
                    th = cand
                    break
    else:
        th = min(_round_up(th, 128), Hp)
        while n_blocks % (th // 128) != 0:            # keep prepared weights as-is
            th -= 128
    nk = Hp // th
    assert nk * th == Hp

    # Two independent sub-chains per step when the hidden tile allows it.
    n_split = 2 if (th >= 256 and (th // 128) % 2 == 0) else 1
    chunk = th // n_split

    # --- activations: skip pad copies in the aligned case.
    aligned = (d_model == Dp) and (M == Mp)
    x_flat = x.reshape(M, d_model).astype(compute_dtype)
    if not aligned:
        x_flat = jnp.pad(x_flat, ((0, Mp - M), (0, Dp - d_model)))

    weights_resident = (nk == 1)
    need = vmem_estimate(th, weights_resident)
    vmem_limit = int(min(max(int(1.25 * need) + (2 << 20), 32 << 20),
                         int(0.9 * cap)))

    weight_bytes = ((w1_p.size + w2_p.size) * c_itemsize
                    + (b1_p.size + b2_p.size) * 4)
    cost = pl.CostEstimate(
        flops=4 * M * d_model * d_hidden,
        transcendentals=M * d_hidden,
        bytes_accessed=int(Mp * Dp * (c_itemsize + o_itemsize)
                           + weight_bytes * (1 if weights_resident else ni)),
    )

    kernel = _make_ff_kernel(nk, n_split, chunk, compute_dtype)
    scratch = [] if nk == 1 else [pltpu.VMEM((tm, Dp), jnp.float32)]

    def _call(allow_single_buffer):
        sb_w = allow_single_buffer and weights_resident   # constant only when nk == 1
        sb_c = allow_single_buffer                        # b2 index is always constant
        grid_spec = pltpu.PrefetchScalarGridSpec(
            num_scalar_prefetch=0,
            grid=(ni, nk),
            in_specs=[
                pl.BlockSpec((tm, Dp), lambda i, k: (i, 0)),          # x rows
                _block_spec((Dp, th), lambda i, k: (0, k), sb_w),     # W1 (in,out)
                _block_spec((1, th), lambda i, k: (0, k), sb_w),      # b1 slice
                _block_spec((th, Dp), lambda i, k: (k, 0), sb_w),     # W2 (in,out)
                _block_spec((1, Dp), lambda i, k: (0, 0), sb_c),      # b2
            ],
            out_specs=pl.BlockSpec((tm, Dp), lambda i, k: (i, 0)),
            scratch_shapes=scratch,
        )
        return pl.pallas_call(
            kernel,
            out_shape=jax.ShapeDtypeStruct((Mp, Dp), out_dtype),
            grid_spec=grid_spec,
            compiler_params=pltpu.CompilerParams(
                dimension_semantics=("parallel", "arbitrary"),
                vmem_limit_bytes=vmem_limit,
            ),
            cost_estimate=cost,
        )(x_flat, w1_p, b1_p, w2_p, b2_p)

    try:
        out = _call(allow_single_buffer=True)
    except Exception:
        # pl.Buffered(1) not supported by this jax/Mosaic version -> default buffers.
        out = _call(allow_single_buffer=False)

    if aligned:
        return out.reshape(B, S, d_model)
    return out[:M, :d_model].reshape(B, S, d_model)


def feed_forward(x, w1, b1, w2, b2, *, compute_dtype=jnp.bfloat16, **kwargs):
    """Convenience one-shot API (pays the one-time weight prep on every call).
    For repeated calls, call prepare_feed_forward_params once and reuse it."""
    params = prepare_feed_forward_params(w1, b1, w2, b2, compute_dtype=compute_dtype)
    return feed_forward_prepared(x, params, **kwargs)


def _reference(x, w1, b1, w2, b2):
    h = jnp.einsum("bsd,hd->bsh", x, w1) + b1
    h = 0.5 * h * (1.0 + lax.erf(h * _INV_SQRT2))
    return jnp.einsum("bsh,dh->bsd", h, w2) + b2


if __name__ == "__main__":
    # small shapes consistent with the module: (batch, seq, d_model)
    B, S, d_model, d_hidden = 2, 8, 32, 256
    key = jax.random.PRNGKey(0)
    kx, k1, k2, k3, k4, k5, k6, k7, k8, k9 = jax.random.split(key, 10)

    x = jax.random.normal(kx, (B, S, d_model), dtype=jnp.float32)

    # deterministic parameter init (PyTorch Linear layout: weight (out, in))
    lim1 = 1.0 / math.sqrt(d_model)
    lim2 = 1.0 / math.sqrt(d_hidden)
    w1 = jax.random.uniform(k1, (d_hidden, d_model), jnp.float32, -lim1, lim1)
    b1 = jax.random.uniform(k2, (d_hidden,), jnp.float32, -lim1, lim1)
    w2 = jax.random.uniform(k3, (d_model, d_hidden), jnp.float32, -lim2, lim2)
    b2 = jax.random.uniform(k4, (d_model,), jnp.float32, -lim2, lim2)

    y_ref = _reference(x, w1, b1, w2, b2)

    # 1) f32 path, small tiles: multiple row tiles (ni=2), hidden reduction
    #    (nk=2) exercising the init-by-assign accumulator, d_model 32 -> 128
    #    lane padding.
    p32 = prepare_feed_forward_params(w1, b1, w2, b2, compute_dtype=jnp.float32)
    y32 = feed_forward_prepared(x, p32, tm=8, th=128)
    y32 = jax.block_until_ready(y32)
    assert y32.shape == (B, S, d_model)
    assert jnp.allclose(y32, y_ref, atol=2e-3, rtol=2e-3), "f32 path mismatch"

    # 2) default fast path: bf16 MXU operands, weights fully resident (nk=1,
    #    single-buffered weight specs, no accumulator), split GELU/MXU chains.
    pbf = prepare_feed_forward_params(w1, b1, w2, b2)  # bf16
    ybf = feed_forward_prepared(x, pbf)
    ybf = jax.block_until_ready(ybf)
    assert ybf.shape == (B, S, d_model)
    assert jnp.allclose(ybf, y_ref, atol=5e-2, rtol=5e-2), "bf16 path mismatch"

    # 3) 128-aligned d_model: exercises the pad-free activation fast path.
    d_model2, d_hidden2 = 128, 512
    x2 = jax.random.normal(k5, (B, S, d_model2), dtype=jnp.float32)
    l1 = 1.0 / math.sqrt(d_model2)
    l2 = 1.0 / math.sqrt(d_hidden2)
    w1b = jax.random.uniform(k6, (d_hidden2, d_model2), jnp.float32, -l1, l1)
    b1b = jax.random.uniform(k7, (d_hidden2,), jnp.float32, -l1, l1)
    w2b = jax.random.uniform(k8, (d_model2, d_hidden2), jnp.float32, -l2, l2)
    b2b = jax.random.uniform(k9, (d_model2,), jnp.float32, -l2, l2)
    y2_ref = _reference(x2, w1b, b1b, w2b, b2b)
    y2 = feed_forward_prepared(
        x2, prepare_feed_forward_params(w1b, b1b, w2b, b2b))
    y2 = jax.block_until_ready(y2)
    assert y2.shape == (B, S, d_model2)
    assert jnp.allclose(y2, y2_ref, atol=5e-2, rtol=5e-2), "aligned path mismatch"

    print("KERNEL_OK")
</pallas_src>

<mosaic_0001>
module attributes {stable_mosaic.version = 11 : i64} {
  func.func @kernel(%arg0: i32, %arg1: i32, %arg2: memref<8x128xf32, #tpu.memory_space<vmem>>, %arg3: memref<128x128xf32, #tpu.memory_space<vmem>>, %arg4: memref<1x128xf32, #tpu.memory_space<vmem>>, %arg5: memref<128x128xf32, #tpu.memory_space<vmem>>, %arg6: memref<1x128xf32, #tpu.memory_space<vmem>>, %arg7: memref<8x128xf32, #tpu.memory_space<vmem>>, %arg8: memref<8x128xf32, #tpu.memory_space<vmem>>) attributes {dimension_semantics = [#tpu.dimension_semantics<parallel>, #tpu.dimension_semantics<arbitrary>], iteration_bounds = array<i64: 2, 2>, scalar_prefetch = 0 : i64, scratch_operands = 1 : i64, tpu.core_type = #tpu.core_type<tc>, window_params = [{transform_indices = @transform_0, window_bounds = array<i64: 8, 128>}, {transform_indices = @transform_1, window_bounds = array<i64: 128, 128>}, {transform_indices = @transform_2, window_bounds = array<i64: 1, 128>}, {transform_indices = @transform_3, window_bounds = array<i64: 128, 128>}, {pipeline_mode = #tpu.pipeline_mode<synchronous>, transform_indices = @transform_4, window_bounds = array<i64: 1, 128>}, {transform_indices = @transform_5, window_bounds = array<i64: 8, 128>}]} {
    %c0 = arith.constant 0 : index
    %c0_0 = arith.constant 0 : index
    %0 = vector.load %arg2[%c0, %c0_0] : memref<8x128xf32, #tpu.memory_space<vmem>>, vector<8x128xf32>
    %c0_1 = arith.constant 0 : index
    %c0_2 = arith.constant 0 : index
    %1 = vector.load %arg3[%c0_1, %c0_2] : memref<128x128xf32, #tpu.memory_space<vmem>>, vector<128x128xf32>
    %cst = arith.constant dense<0.000000e+00> : vector<8x128xf32>
    %2 = tpu.matmul %0, %1, %cst {dimension_numbers = #tpu.dot_dimension_numbers<[1], [0], [0], [1], [0, 0, 1, 1], [], []>} : vector<8x128xf32>, vector<128x128xf32>, vector<8x128xf32> -> vector<8x128xf32>
    %c0_3 = arith.constant 0 : index
    %c0_4 = arith.constant 0 : index
    %3 = vector.load %arg4[%c0_3, %c0_4] : memref<1x128xf32, #tpu.memory_space<vmem>>, vector<1x128xf32>
    %4 = vector.broadcast %3 : vector<1x128xf32> to vector<8x128xf32>
    %5 = arith.addf %2, %4 : vector<8x128xf32>
    %cst_5 = arith.constant 5.000000e-01 : f32
    %6 = vector.broadcast %cst_5 : f32 to vector<8x128xf32>
    %7 = arith.mulf %6, %5 : vector<8x128xf32>
    %cst_6 = arith.constant 0.707106769 : f32
    %8 = vector.broadcast %cst_6 : f32 to vector<8x128xf32>
    %9 = arith.mulf %5, %8 : vector<8x128xf32>
    %10 = math.erf %9 : vector<8x128xf32>
    %cst_7 = arith.constant 1.000000e+00 : f32
    %11 = vector.broadcast %cst_7 : f32 to vector<8x128xf32>
    %12 = arith.addf %11, %10 : vector<8x128xf32>
    %13 = arith.mulf %7, %12 : vector<8x128xf32>
    %c0_8 = arith.constant 0 : index
    %c0_9 = arith.constant 0 : index
    %14 = vector.load %arg5[%c0_8, %c0_9] : memref<128x128xf32, #tpu.memory_space<vmem>>, vector<128x128xf32>
    %cst_10 = arith.constant dense<0.000000e+00> : vector<8x128xf32>
    %15 = tpu.matmul %13, %14, %cst_10 {dimension_numbers = #tpu.dot_dimension_numbers<[1], [0], [0], [1], [0, 0, 1, 1], [], []>} : vector<8x128xf32>, vector<128x128xf32>, vector<8x128xf32> -> vector<8x128xf32>
    %c0_i32 = arith.constant 0 : i32
    %16 = arith.cmpi eq, %arg1, %c0_i32 : i32
    %17 = arith.extui %16 : i1 to i32
    %c0_i32_11 = arith.constant 0 : i32
    %18 = arith.cmpi ne, %17, %c0_i32_11 : i32
    scf.if %18 {
      %c0_15 = arith.constant 0 : index
      %c0_16 = arith.constant 0 : index
      %25 = vector.load %arg8[%c0_15, %c0_16] : memref<8x128xf32, #tpu.memory_space<vmem>>, vector<8x128xf32>
      tpu.vector_store %arg8[%c0_15, %c0_16], %15 {strides = array<i32>} : memref<8x128xf32, #tpu.memory_space<vmem>>, vector<8x128xf32>,
    } else {
    }
    %c0_i32_12 = arith.constant 0 : i32
    %19 = arith.cmpi sgt, %arg1, %c0_i32_12 : i32
    %20 = arith.extui %19 : i1 to i32
    %c0_i32_13 = arith.constant 0 : i32
    %21 = arith.cmpi ne, %20, %c0_i32_13 : i32
    scf.if %21 {
      %c0_15 = arith.constant 0 : index
      %c0_16 = arith.constant 0 : index
      %25 = vector.load %arg8[%c0_15, %c0_16] : memref<8x128xf32, #tpu.memory_space<vmem>>, vector<8x128xf32>
      %26 = arith.addf %25, %15 : vector<8x128xf32>
      %c0_17 = arith.constant 0 : index
      %c0_18 = arith.constant 0 : index
      %27 = vector.load %arg8[%c0_17, %c0_18] : memref<8x128xf32, #tpu.memory_space<vmem>>, vector<8x128xf32>
      tpu.vector_store %arg8[%c0_17, %c0_18], %26 {strides = array<i32>} : memref<8x128xf32, #tpu.memory_space<vmem>>, vector<8x128xf32>,
    } else {
    }
    %c1_i32 = arith.constant 1 : i32
    %22 = arith.cmpi eq, %arg1, %c1_i32 : i32
    %23 = arith.extui %22 : i1 to i32
    %c0_i32_14 = arith.constant 0 : i32
    %24 = arith.cmpi ne, %23, %c0_i32_14 : i32
    scf.if %24 {
      %c0_15 = arith.constant 0 : index
      %c0_16 = arith.constant 0 : index
      %25 = vector.load %arg8[%c0_15, %c0_16] : memref<8x128xf32, #tpu.memory_space<vmem>>, vector<8x128xf32>
      %c0_17 = arith.constant 0 : index
      %c0_18 = arith.constant 0 : index
      %26 = vector.load %arg6[%c0_17, %c0_18] : memref<1x128xf32, #tpu.memory_space<vmem>>, vector<1x128xf32>
      %27 = vector.broadcast %26 : vector<1x128xf32> to vector<8x128xf32>
      %28 = arith.addf %25, %27 : vector<8x128xf32>
      %c0_19 = arith.constant 0 : index
      %c0_20 = arith.constant 0 : index
      %29 = vector.load %arg7[%c0_19, %c0_20] : memref<8x128xf32, #tpu.memory_space<vmem>>, vector<8x128xf32>
      tpu.vector_store %arg7[%c0_19, %c0_20], %28 {strides = array<i32>} : memref<8x128xf32, #tpu.memory_space<vmem>>, vector<8x128xf32>,
    } else {
    }
    return
  }
  func.func @transform_0(%arg0: i32, %arg1: i32) -> (i32, i32) {
    %c0_i32 = arith.constant 0 : i32
    %c0_i32_0 = arith.constant 0 : i32
    return %arg0, %c0_i32 : i32, i32
  }
  func.func @transform_1(%arg0: i32, %arg1: i32) -> (i32, i32) {
    %c0_i32 = arith.constant 0 : i32
    %c0_i32_0 = arith.constant 0 : i32
    return %c0_i32, %arg1 : i32, i32
  }
  func.func @transform_2(%arg0: i32, %arg1: i32) -> (i32, i32) {
    %c0_i32 = arith.constant 0 : i32
    %c0_i32_0 = arith.constant 0 : i32
    return %c0_i32, %arg1 : i32, i32
  }
  func.func @transform_3(%arg0: i32, %arg1: i32) -> (i32, i32) {
    %c0_i32 = arith.constant 0 : i32
    %c0_i32_0 = arith.constant 0 : i32
    return %arg1, %c0_i32 : i32, i32
  }
  func.func @transform_4(%arg0: i32, %arg1: i32) -> (i32, i32) {
    %c0_i32 = arith.constant 0 : i32
    %c0_i32_0 = arith.constant 0 : i32
    %c0_i32_1 = arith.constant 0 : i32
    return %c0_i32, %c0_i32_0 : i32, i32
  }
  func.func @transform_5(%arg0: i32, %arg1: i32) -> (i32, i32) {
    %c0_i32 = arith.constant 0 : i32
    %c0_i32_0 = arith.constant 0 : i32
    return %arg0, %c0_i32 : i32, i32
  }
}

module attributes {stable_mosaic.version = 11 : i64} {
  func.func @kernel(%arg0: i32, %arg1: i32, %arg2: memref<8x128xf32, #tpu.memory_space<vmem>>, %arg3: memref<128x128xf32, #tpu.memory_space<vmem>>, %arg4: memref<1x128xf32, #tpu.memory_space<vmem>>, %arg5: memref<128x128xf32, #tpu.memory_space<vmem>>, %arg6: memref<1x128xf32, #tpu.memory_space<vmem>>, %arg7: memref<8x128xf32, #tpu.memory_space<vmem>>, %arg8: memref<8x128xf32, #tpu.memory_space<vmem>>) attributes {dimension_semantics = [#tpu.dimension_semantics<parallel>, #tpu.dimension_semantics<arbitrary>], iteration_bounds = array<i64: 2, 2>, scalar_prefetch = 0 : i64, scratch_operands = 1 : i64, tpu.core_type = #tpu.core_type<tc>, window_params = [{transform_indices = @transform_0, window_bounds = array<i64: 8, 128>}, {transform_indices = @transform_1, window_bounds = array<i64: 128, 128>}, {transform_indices = @transform_2, window_bounds = array<i64: 1, 128>}, {transform_indices = @transform_3, window_bounds = array<i64: 128, 128>}, {pipeline_mode = #tpu.pipeline_mode<synchronous>, transform_indices = @transform_4, window_bounds = array<i64: 1, 128>}, {transform_indices = @transform_5, window_bounds = array<i64: 8, 128>}]} {
    %c0 = arith.constant 0 : index
    %c0_0 = arith.constant 0 : index
    %0 = vector.load %arg2[%c0, %c0_0] : memref<8x128xf32, #tpu.memory_space<vmem>>, vector<8x128xf32>
    %c0_1 = arith.constant 0 : index
    %c0_2 = arith.constant 0 : index
    %1 = vector.load %arg3[%c0_1, %c0_2] : memref<128x128xf32, #tpu.memory_space<vmem>>, vector<128x128xf32>
    %cst = arith.constant dense<0.000000e+00> : vector<8x128xf32>
    %2 = tpu.matmul %0, %1, %cst {dimension_numbers = #tpu.dot_dimension_numbers<[1], [0], [0], [1], [0, 0, 1, 1], [], []>} : vector<8x128xf32>, vector<128x128xf32>, vector<8x128xf32> -> vector<8x128xf32>
    %c0_3 = arith.constant 0 : index
    %c0_4 = arith.constant 0 : index
    %3 = vector.load %arg4[%c0_3, %c0_4] : memref<1x128xf32, #tpu.memory_space<vmem>>, vector<1x128xf32>
    %4 = vector.broadcast %3 : vector<1x128xf32> to vector<8x128xf32>
    %5 = arith.addf %2, %4 : vector<8x128xf32>
    %cst_5 = arith.constant 5.000000e-01 : f32
    %6 = vector.broadcast %cst_5 : f32 to vector<8x128xf32>
    %7 = arith.mulf %6, %5 : vector<8x128xf32>
    %cst_6 = arith.constant 0.707106769 : f32
    %8 = vector.broadcast %cst_6 : f32 to vector<8x128xf32>
    %9 = arith.mulf %5, %8 : vector<8x128xf32>
    %10 = math.erf %9 : vector<8x128xf32>
    %cst_7 = arith.constant 1.000000e+00 : f32
    %11 = vector.broadcast %cst_7 : f32 to vector<8x128xf32>
    %12 = arith.addf %11, %10 : vector<8x128xf32>
    %13 = arith.mulf %7, %12 : vector<8x128xf32>
    %c0_8 = arith.constant 0 : index
    %c0_9 = arith.constant 0 : index
    %14 = vector.load %arg5[%c0_8, %c0_9] : memref<128x128xf32, #tpu.memory_space<vmem>>, vector<128x128xf32>
    %cst_10 = arith.constant dense<0.000000e+00> : vector<8x128xf32>
    %15 = tpu.matmul %13, %14, %cst_10 {dimension_numbers = #tpu.dot_dimension_numbers<[1], [0], [0], [1], [0, 0, 1, 1], [], []>} : vector<8x128xf32>, vector<128x128xf32>, vector<8x128xf32> -> vector<8x128xf32>
    %c0_i32 = arith.constant 0 : i32
    %16 = arith.cmpi eq, %arg1, %c0_i32 : i32
    %17 = arith.extui %16 : i1 to i32
    %c0_i32_11 = arith.constant 0 : i32
    %18 = arith.cmpi ne, %17, %c0_i32_11 : i32
    scf.if %18 {
      %c0_15 = arith.constant 0 : index
      %c0_16 = arith.constant 0 : index
      %25 = vector.load %arg8[%c0_15, %c0_16] : memref<8x128xf32, #tpu.memory_space<vmem>>, vector<8x128xf32>
      tpu.vector_store %arg8[%c0_15, %c0_16], %15 {strides = array<i32>} : memref<8x128xf32, #tpu.memory_space<vmem>>, vector<8x128xf32>,
    } else {
    }
    %c0_i32_12 = arith.constant 0 : i32
    %19 = arith.cmpi sgt, %arg1, %c0_i32_12 : i32
    %20 = arith.extui %19 : i1 to i32
    %c0_i32_13 = arith.constant 0 : i32
    %21 = arith.cmpi ne, %20, %c0_i32_13 : i32
    scf.if %21 {
      %c0_15 = arith.constant 0 : index
      %c0_16 = arith.constant 0 : index
      %25 = vector.load %arg8[%c0_15, %c0_16] : memref<8x128xf32, #tpu.memory_space<vmem>>, vector<8x128xf32>
      %26 = arith.addf %25, %15 : vector<8x128xf32>
      %c0_17 = arith.constant 0 : index
      %c0_18 = arith.constant 0 : index
      %27 = vector.load %arg8[%c0_17, %c0_18] : memref<8x128xf32, #tpu.memory_space<vmem>>, vector<8x128xf32>
      tpu.vector_store %arg8[%c0_17, %c0_18], %26 {strides = array<i32>} : memref<8x128xf32, #tpu.memory_space<vmem>>, vector<8x128xf32>,
    } else {
    }
    %c1_i32 = arith.constant 1 : i32
    %22 = arith.cmpi eq, %arg1, %c1_i32 : i32
    %23 = arith.extui %22 : i1 to i32
    %c0_i32_14 = arith.constant 0 : i32
    %24 = arith.cmpi ne, %23, %c0_i32_14 : i32
    scf.if %24 {
      %c0_15 = arith.constant 0 : index
      %c0_16 = arith.constant 0 : index
      %25 = vector.load %arg8[%c0_15, %c0_16] : memref<8x128xf32, #tpu.memory_space<vmem>>, vector<8x128xf32>
      %c0_17 = arith.constant 0 : index
      %c0_18 = arith.constant 0 : index
      %26 = vector.load %arg6[%c0_17, %c0_18] : memref<1x128xf32, #tpu.memory_space<vmem>>, vector<1x128xf32>
      %27 = vector.broadcast %26 : vector<1x128xf32> to vector<8x128xf32>
      %28 = arith.addf %25, %27 : vector<8x128xf32>
      %c0_19 = arith.constant 0 : index
      %c0_20 = arith.constant 0 : index
      %29 = vector.load %arg7[%c0_19, %c0_20] : memref<8x128xf32, #tpu.memory_space<vmem>>, vector<8x128xf32>
      tpu.vector_store %arg7[%c0_19, %c0_20], %28 {strides = array<i32>} : memref<8x128xf32, #tpu.memory_space<vmem>>, vector<8x128xf32>,
    } else {
    }
    return
  }
  func.func @transform_0(%arg0: i32, %arg1: i32) -> (i32, i32) {
    %c0_i32 = arith.constant 0 : i32
    %c0_i32_0 = arith.constant 0 : i32
    return %arg0, %c0_i32 : i32, i32
  }
  func.func @transform_1(%arg0: i32, %arg1: i32) -> (i32, i32) {
    %c0_i32 = arith.constant 0 : i32
    %c0_i32_0 = arith.constant 0 : i32
    return %c0_i32, %arg1 : i32, i32
  }
  func.func @transform_2(%arg0: i32, %arg1: i32) -> (i32, i32) {
    %c0_i32 = arith.constant 0 : i32
    %c0_i32_0 = arith.constant 0 : i32
    return %c0_i32, %arg1 : i32, i32
  }
  func.func @transform_3(%arg0: i32, %arg1: i32) -> (i32, i32) {
    %c0_i32 = arith.constant 0 : i32
    %c0_i32_0 = arith.constant 0 : i32
    return %arg1, %c0_i32 : i32, i32
  }
  func.func @transform_4(%arg0: i32, %arg1: i32) -> (i32, i32) {
    %c0_i32 = arith.constant 0 : i32
    %c0_i32_0 = arith.constant 0 : i32
    %c0_i32_1 = arith.constant 0 : i32
    return %c0_i32, %c0_i32_0 : i32, i32
  }
  func.func @transform_5(%arg0: i32, %arg1: i32) -> (i32, i32) {
    %c0_i32 = arith.constant 0 : i32
    %c0_i32_0 = arith.constant 0 : i32
    return %arg0, %c0_i32 : i32, i32
  }
}

</mosaic_0001>

<bundles_post_ra>
// kernel: tpu_custom_call.1
= control target key start
LH: loop header
LB: loop body
LE: loop exit
PB: predicated region body
PF: predicated region fallthrough
CT: control target
= control target key end

     0   :  { %s1423_s0 = inlined_call_operand.hbm [shape: f32[16,128], index: 0, kind: input, shape index: {}]   ;;  %s1424_s1 = inlined_call_operand.hbm [shape: f32[128,256], index: 1, kind: input, shape index: {}]   ;;  %s1425_s2 = inlined_call_operand.hbm [shape: f32[1,256], index: 2, kind: input, shape index: {}]   ;;  %s1426_s3 = inlined_call_operand.hbm [shape: f32[256,128], index: 3, kind: input, shape index: {}]   ;;  %s1427_s4 = inlined_call_operand.vmem [shape: f32[1,128], index: 4, kind: input, shape index: {}]   ;;  %s1428_s5 = inlined_call_operand.hbm [shape: f32[16,128], index: 5, kind: output, shape index: {}]  }
   0x1   :  { %1441 = sst [smem:[#allocation26_spill]] %s1423_s0 }
   0x2   :  { %1442 = sst [smem:[#allocation27_spill]] %s1424_s1 }
   0x3   :  { %1443 = sst [smem:[#allocation28_spill]] %s1427_s4 }
   0x4   :  { %1444 = sst [smem:[#allocation29_spill]] %s1428_s5 }
   0x5   :  { %10 = vsyncpa [#allocation4], 0 }
   0x6   :  { %12 = vsyncpa [#allocation4 + $0x1], 0 }
   0x7   :  { %13 = vsyncpa [#allocation7], 0 }
   0x8   :  { %15 = vsyncpa [#allocation7 + $0x1], 0 }
   0x9   :  { %16 = vsyncpa [#allocation10], 0 }
   0xa   :  { %18 = vsyncpa [#allocation10 + $0x1], 0 }
   0xb   :  { %19 = vsyncpa [#allocation5], 0 }
   0xc   :  { %21 = vsyncpa [#allocation5 + $0x1], 0  ;;  %s1107_s18 = smov 0   ;;  %s1109_s19 = smov 0  }
   0xd   :  { %s1111_s20 = smov 0   ;;  %s1113_s21 = smov 0  }
   0xe   :  { %s1115_s22 = smov 0   ;;  %s1117_s23 = smov 0  }
   0xf   :  { %s1119_s24 = smov 0   ;;  %s1121_s25 = smov 0  }
  0x10   :  { %s1123_s26 = smov 0   ;;  %s1125_s27 = smov 0  }
  0x11   :  { %s1127_s28 = smov 0  }
  0x12 LB: > { %1445 = sst [smem:[#allocation16_spill]] %s1040_s20  ;;  %p54_p0 = scmp.eq.s32.totalorder %s1072_s28, 0  ;;  %s1072_s28 = sphi %s1127_s28, %s27_s28   ;;  %s1068_s27 = sphi %s1125_s27, %s1481_s27   ;;  %s1064_s26 = sphi %s1123_s26, %s1487_s26   ;;  %s1060_s25 = sphi %s1121_s25, %s1479_s25   ;;  %s1056_s24 = sphi %s1119_s24, %s1486_s24   ;;  %s1052_s23 = sphi %s1117_s23, %s1478_s23   ;;  %s1048_s22 = sphi %s1115_s22, %s1485_s22   ;;  %s1044_s21 = sphi %s1113_s21, %s1484_s21   ;;  %s1040_s20 = sphi %s1111_s20, %s1476_s20   ;;  %s1036_s19 = sphi %s1109_s19, %s1483_s19   ;;  %s1032_s18 = sphi %s1107_s18, %s1482_s18  }
  0x13   : > { %1446 = sst [smem:[#allocation17_spill]] %s1044_s21  ;;  %p79_p1 = scmp.ne.s32.totalorder %s1040_s20, %s1036_s19 }
  0x14   : > { %1447 = sst [smem:[#allocation18_spill]] %s1052_s23  ;;  %p1434_p2 = scmp.lt.s32.totalorder %s1072_s28, 4 }
  0x15   : > { %1448 = sst [smem:[#allocation19_spill]] %s1060_s25  ;;  %s230_s30 = sand.u32 1, %s1072_s28  }
  0x16   : > { %1449 = sst [smem:[#allocation20_spill]] %s1068_s27  ;;  %p81_p3 = por %p79_p1, %p54_p0 }
  0x17   : > { %s1171_s6 = sand.u32 1, %s1040_s20   ;;  %s680_s7 = sshll.u32 %s1064_s26, 3 }
  0x18   : > { %s1429_s8 = sshll.u32 %s1171_s6, 7  ;;  %s1450_s1 = sld [smem:[#allocation27_spill]] }
  0x19   : > { %s234_s13 = scalar_lea.vmem [#allocation6], %s1429_s8  ;;  %p1182_p4 = pnand %p1434_p2, %p81_p3 }
  0x1a   : > { %s241_s14 = sshll.u32 %s234_s13, 4  ;;  %s1186_s16 = scalar_lea.sflag [#allocation7], %s230_s30  ;;  %s242_s14 = int_to_ptr.vmem [resolvable:$true] %s241_s14 }
  0x1b   : > { %s1074_s17 = smov 256   ;;  %s1431_s9 = smov 8  }
  0x1c   : > { %p684_p5 = scmp.ge.s32.totalorder %s1072_s28, 1  ;;  %p288_p6 = scmp.lt.s32.totalorder %s1072_s28, 5 }
  0x1d   : > { %s1200_s10 = sadd.s32 4294967295, %s1072_s28   ;;  %s36_s13 = sadd.s32 1, %s1064_s26 }
  0x1e   : > { %s238_s11 = scalar_lea.hbm %s1450_s1, %s680_s7  ;;  %s1430_s7 = smov 128  }
  0x1f   : > { %s239_s12 = sshll.u32 %s238_s11, 4  ;;  %p1195_p7 = pnand %p684_p5, %p288_p6  ;;  %s240_s12 = int_to_ptr.hbm [resolvable:$true] %s239_s12 }
  0x20   : > { %714 = dma.hbm_to_vmem [thread:$0]  (!%p1182_p4), %s240_s12, 2048, %s242_s14, %s1186_s16, %s1074_s17, %s1430_s7, %s1431_s9  }
  0x21   : > { %s674_s11 = sadd.s32 4294967294, %s1072_s28   ;;  %p37_p8 = scmp.ge.s32.totalorder %s36_s13, 2 }
  0x22   : > { %s39_s8 = sadd.s32 1, %s1068_s27  ;;  %s46_s12 = sadd.s32 1, %s1052_s23 }
  0x23   : > { %p53_p9 = scmp.ne.s32.totalorder %s1052_s23, %s1048_s22  ;;  %s1489_s13 = smov (%p37_p8, %s36_s13), 0 }
  0x24   : > { %1453 = sst [smem:[#allocation21_spill]] %s1489_s13  ;;  %s1491_s8 = smov (!%p37_p8, %s39_s8), %s1068_s27 }
  0x25   : > { %p1216_p10 = por %p54_p0, %p53_p9  ;;  %p59_p11 = scmp.ne.s32.totalorder %s1048_s22, %s1044_s21 }
  0x26   : > { %p41_p12 = scmp.ge.s32.totalorder %s1491_s8, 2  ;;  %p60_p13 = scmp.eq.s32.totalorder %s1200_s10, 0 }
  0x27   : > { %s69_s17 = ssub.s32 %s1064_s26, %s1489_s13  ;;  %p85_p1 = scmp.ne.s32.totalorder %s1036_s19, %s1032_s18 }
  0x28   : > { %s1493_s8 = smov (%p41_p12, %s1491_s8), 0  ;;  %p1232_p3 = por %p60_p13, %p59_p11 }
  0x29   : > { %1455 = sst [smem:[#allocation22_spill]] %s1493_s8  ;;  %p70_p0 = scmp.eq.s32.totalorder %s69_s17, 0 }
  0x2a   : > { %s43_s9 = ssub.s32 %s1068_s27, %s1493_s8  ;;  %p1238_p5 = por %p85_p1, %p60_p13 }
  0x2b   : > { %p44_p6 = scmp.eq.s32.totalorder %s43_s9, 0  ;;  %p182_p8 = scmp.eq.s32.totalorder %s1200_s10, 3 }
  0x2c   : > { %s1458_s1 = sadd.s32 1, %s1040_s20  ;;  %p188_p2 = scmp.eq.s32.totalorder %s674_s11, 3 }
  0x2d   : > { %s1246_s18 = scalar_select %p70_p0, %s1040_s20, %s1458_s1  }
  0x2e   : > { %s1249_s13 = scalar_select %p44_p6, %s1052_s23, %s46_s12  }
  0x2f   : > { %1459 = sst [smem:[#allocation23_spill]] %s1246_s18  ;;  %p1254_p12 = por %p182_p8, %p53_p9 }
  0x30   : > { %1460 = sst [smem:[#allocation24_spill]] %s1249_s13  ;;  %s211_s17 = sand.u32 1, %s1052_s23  }
  0x31   : > { %s678_s8 = sshll.u32 %s1068_s27, 3  ;;  %p1263_p13 = por %p188_p2, %p59_p11 }
  0x32   : > { %s677_s25 = sshll.u32 %s211_s17, 3  ;;  %s1464_s0 = sld [smem:[#allocation26_spill]] }
  0x33   : > { %s1462_s9 = scalar_select %p1263_p13, 1, 0 }
  0x34   : > { %s215_s11 = scalar_lea.vmem [#allocation3], %s677_s25  ;;  %p1465_p9 = scmp.lt.s32.totalorder %s1072_s28, 4 }
  0x35   : > { %1463 = sst [smem:[#allocation25_spill]] %s1462_s9  ;;  %s223_s23 = sshll.u32 %s215_s11, 4  ;;  %s224_s23 = int_to_ptr.vmem [resolvable:$true] %s223_s23 }
  0x36   : > { %p709_p2 = pnand %p1465_p9, %p1216_p10  ;;  %s257_s20 = scalar_lea.hbm %s1425_s2, %s1064_s26 }
  0x37   : > { %s259_s9 = sshll.u32 %s257_s20, 4  ;;  %s212_s4 = scalar_lea.sflag [#allocation4], %s211_s17  ;;  %s260_s9 = int_to_ptr.hbm [resolvable:$true] %s259_s9 }
  0x38   : > { %s219_s12 = scalar_lea.hbm %s1464_s0, %s678_s8  ;;  %s254_s8 = scalar_lea.vmem [#allocation8], %s1171_s6 }
  0x39   : > { %s221_s13 = sshll.u32 %s219_s12, 4  ;;  %s261_s1 = sshll.u32 %s254_s8, 4  ;;  %s222_s13 = int_to_ptr.hbm [resolvable:$true] %s221_s13  ;;  %s262_s1 = int_to_ptr.vmem [resolvable:$true] %s261_s1 }
  0x3a   : > { %711 = dma.hbm_to_vmem [thread:$0]  (!%p709_p2), %s222_s13, 128, %s224_s23, %s212_s4  }
  0x3b   : > { %717 = dma.hbm_to_vmem [thread:$0]  (!%p1182_p4), %s260_s9, 16, %s262_s1, %s1186_s16  }
  0x3c   : > { %s697_s25 = sshll.u32 %s1064_s26, 7  ;;  %s1466_s0 = sshll.u32 %s1171_s6, 7 }
  0x3d   : > { %s277_s11 = scalar_lea.hbm %s1426_s3, %s697_s25  ;;  %s272_s21 = scalar_lea.vmem [#allocation9], %s1466_s0 }
  0x3e   : > { %s280_s27 = sshll.u32 %s272_s21, 4  ;;  %s278_s18 = sshll.u32 %s277_s11, 4  ;;  %s281_s27 = int_to_ptr.vmem [resolvable:$true] %s280_s27  ;;  %s279_s18 = int_to_ptr.hbm [resolvable:$true] %s278_s18 }
  0x3f   : > { %s269_s20 = scalar_lea.sflag [#allocation10], %s1171_s6  ;;  %s1467_s23 = smov 8  }
  0x40   : > { %s1468_s13 = smov 128   ;;  %292 = sbr.rel (%p1195_p7) target bundleno = 459 (0x1cb), region = 40 }
  0x41   : > { %720 = dma.hbm_to_vmem [thread:$0]  (!%p1182_p4), %s279_s18, 2048, %s281_s27, %s269_s20, %s1468_s13, %s1468_s13, %s1467_s23  }
  0x42   : > { %s1297_s16 = sand.u32 (!%p1195_p7), 1, %s1048_s22  }
  0x43   : > { %s685_s0 = sshll.u32 (!%p1195_p7), %s1297_s16, 3  ;;  %s295_s21 = scalar_lea.sflag (!%p1195_p7), [#allocation4], %s1297_s16 }
  0x44   : > { %s1303_s17 = scalar_lea.vmem (!%p1195_p7), [#allocation3], %s685_s0 }
  0x45   : > { %1015 = dma.done.wait (%p1232_p3), %s295_s21, 128  }
  0x46   : > { %1017 = vsyncadd (%p1232_p3), %s295_s21, 4294967168  ;;  %s304_s6 = sand.u32 1, %s1200_s10   ;;  %s1311_s15 = sand.u32 1, %s1036_s19  }
  0x47   : > { %s686_s30 = sshll.u32 %s1311_s15, 7  ;;  %s305_s9 = scalar_lea.sflag [#allocation7], %s304_s6 }
  0x48   : > { %s1314_s4 = scalar_lea.vmem [#allocation6], %s686_s30 }
  0x49   : > { %1019 = dma.done.wait (%p1238_p5), %s305_s9, 2064  }
  0x4a   : > { %1021 = vsyncadd (%p1238_p5), %s305_s9, 4294965232  ;;  %s317_s7 = scalar_lea.vmem [#allocation8], %s1311_s15  ;;  %s324_s8 = scalar_lea.sflag [#allocation10], %s1311_s15 }
  0x4b   : > { %s1322_s1 = scalar_lea.vmem [#allocation9], %s686_s30 }
  0x4c   : > { %1023 = dma.done.wait (%p1238_p5), %s324_s8, 2048  }
  0x4d   : > { %1025 = vsyncadd (%p1238_p5), %s324_s8, 4294965248  ;;  %v386_v0 = vld [vmem:[%s1314_s4 + $0x78] sm:$0xff]  ;;  %v385_v1 = vld [vmem:[%s1314_s4 + $0x70] sm:$0xff]  ;;  %s368_s29 = scalar_lea.vmem [#allocation11], %s685_s0  ;;  %p690_p4 = scmp.ne.s32.totalorder %s1056_s24, 0 }
  0x4e   : > { %391 = vmatpush.msra.mxu0 %v386_v0  ;;  %v384_v2 = vld [vmem:[%s1314_s4 + $0x68] sm:$0xff]  ;;  %v383_v3 = vld [vmem:[%s1314_s4 + $0x60] sm:$0xff]  ;;  %v382_v4 = vld [vmem:[%s1314_s4 + $0x58] sm:$0xff] }
  0x4f   : > { %v381_v5 = vld [vmem:[%s1314_s4 + $0x50] sm:$0xff]  ;;  %v380_v6 = vld [vmem:[%s1314_s4 + $0x48] sm:$0xff]  ;;  %v379_v7 = vld [vmem:[%s1314_s4 + $0x40] sm:$0xff] }
  0x50   : > { %392 = vmatpush.msra.mxu0 %v385_v1  ;;  %v378_v8 = vld [vmem:[%s1314_s4 + $0x38] sm:$0xff]  ;;  %v377_v9 = vld [vmem:[%s1314_s4 + $0x30] sm:$0xff]  ;;  %v376_v10 = vld [vmem:[%s1314_s4 + $0x28] sm:$0xff] }
  0x51   : > { %v375_v11 = vld [vmem:[%s1314_s4 + $0x20] sm:$0xff]  ;;  %v374_v12 = vld [vmem:[%s1314_s4 + $0x18] sm:$0xff]  ;;  %v373_v13 = vld [vmem:[%s1314_s4 + $0x10] sm:$0xff] }
  0x52   : > { %393 = vmatpush.msra.mxu0 %v384_v2  ;;  %v372_v14 = vld [vmem:[%s1314_s4 + $0x8] sm:$0xff]  ;;  %v371_v15 = vld [vmem:[%s1314_s4] sm:$0xff]  ;;  %v370_v16 = vld [vmem:[%s1303_s17] sm:$0xff] }
  0x53   : > { %v470_v17 = vld [vmem:[%s1322_s1 + $0x78] sm:$0xff]  ;;  %v469_v18 = vld [vmem:[%s1322_s1 + $0x70] sm:$0xff]  ;;  %v468_v19 = vld [vmem:[%s1322_s1 + $0x68] sm:$0xff] }
  0x54   : > { %394 = vmatpush.msra.mxu0 %v383_v3  ;;  %471 = vmatpush.msra.mxu1 %v470_v17  ;;  %v467_v20 = vld [vmem:[%s1322_s1 + $0x60] sm:$0xff]  ;;  %v466_v22 = vld [vmem:[%s1322_s1 + $0x58] sm:$0xff]  ;;  %v465_v23 = vld [vmem:[%s1322_s1 + $0x50] sm:$0xff] }
  0x55   : > { %v818_v21 = vld [vmem:[%s317_s7] ss:$0 sm:$0xff]  ;;  %v464_v25 = vld [vmem:[%s1322_s1 + $0x48] sm:$0xff]  ;;  %v462_v29 = vld [vmem:[%s1322_s1 + $0x38] sm:$0xff] }
  0x56   : > { %395 = vmatpush.msra.mxu0 %v382_v4  ;;  %472 = vmatpush.msra.mxu1 %v469_v18  ;;  %v463_v27 = vld [vmem:[%s1322_s1 + $0x40] sm:$0xff]  ;;  %v461_v31 = vld [vmem:[%s1322_s1 + $0x30] sm:$0xff]  ;;  %v460_v33 = vld [vmem:[%s1322_s1 + $0x28] sm:$0xff] }
  0x57   : > { %v459_v36 = vld [vmem:[%s1322_s1 + $0x20] sm:$0xff]  ;;  %v458_v39 = vld [vmem:[%s1322_s1 + $0x18] sm:$0xff]  ;;  %v457_v42 = vld [vmem:[%s1322_s1 + $0x10] sm:$0xff] }
  0x58   : > { %396 = vmatpush.msra.mxu0 %v381_v5  ;;  %473 = vmatpush.msra.mxu1 %v468_v19  ;;  %v456_v45 = vld [vmem:[%s1322_s1 + $0x8] sm:$0xff]  ;;  %v455_v47 = vld [vmem:[%s1322_s1] sm:$0xff] }
  0x5a   : > { %397 = vmatpush.msra.mxu0 %v380_v6  ;;  %474 = vmatpush.msra.mxu1 %v467_v20 }
  0x5c   : > { %398 = vmatpush.msra.mxu0 %v379_v7  ;;  %475 = vmatpush.msra.mxu1 %v466_v22 }
  0x5e   : > { %399 = vmatpush.msra.mxu0 %v378_v8  ;;  %476 = vmatpush.msra.mxu1 %v465_v23 }
  0x60   : > { %400 = vmatpush.msra.mxu0 %v377_v9  ;;  %477 = vmatpush.msra.mxu1 %v464_v25 }
  0x62   : > { %401 = vmatpush.msra.mxu0 %v376_v10  ;;  %478 = vmatpush.msra.mxu1 %v463_v27 }
  0x64   : > { %402 = vmatpush.msra.mxu0 %v375_v11  ;;  %479 = vmatpush.msra.mxu1 %v462_v29 }
  0x66   : > { %403 = vmatpush.msra.mxu0 %v374_v12  ;;  %480 = vmatpush.msra.mxu1 %v461_v31 }
  0x68   : > { %404 = vmatpush.msra.mxu0 %v373_v13  ;;  %481 = vmatpush.msra.mxu1 %v460_v33 }
  0x6a   : > { %405 = vmatpush.msra.mxu0 %v372_v14  ;;  %482 = vmatpush.msra.mxu1 %v459_v36 }
  0x6c   : > { %406 = vmatpush.msra.mxu0 %v371_v15  ;;  %483 = vmatpush.msra.mxu1 %v458_v39 }
  0x6d   : > { %407 = vmatmul.f32.vlgmr.msra.gmra.mxu0 %v370_v16 }
  0x6e   : > { %484 = vmatpush.msra.mxu1 %v457_v42 }
  0x70   : > { %485 = vmatpush.msra.mxu1 %v456_v45 }
  0x72   : > { %486 = vmatpush.msra.mxu1 %v455_v47 }
  0xea   : > { %v408_v24 = vpop.f32.mrf.mxu0 }
  0xeb   : > { %v409_v26 = vadd.f32 %v818_v21, %v408_v24 }
  0xed   : > { %v412_v28 = vmul.f32 0.70710677, %v409_v26  ;;  %v411_v8 = vmul.f32 0.5, %v409_v26 }
  0xef   : > { %v413_v30 = vmul.f32 %v412_v28, %v412_v28 }
  0xf1   : > { %v414_v32 = vmin.f32 %v413_v30, 16.0 }
  0xf3   : > { %v415_v34 = vmul.f32 2.1237322e-06, %v414_v32  ;;  %v426_v35 = vmul.f32 3.8918573e-05, %v414_v32 }
  0xf5   : > { %v416_v37 = vadd.f32 0.00028619796, %v415_v34  ;;  %v427_v38 = vadd.f32 0.001143296, %v426_v35 }
  0xf7   : > { %v417_v40 = vmul.f32 %v416_v37, %v414_v32  ;;  %v428_v41 = vmul.f32 %v427_v38, %v414_v32 }
  0xf9   : > { %v429_v43 = vadd.f32 0.014752088, %v428_v41  ;;  %v418_v44 = vadd.f32 0.0036580483, %v417_v40 }
  0xfb   : > { %v430_v46 = vmul.f32 %v429_v43, %v414_v32  ;;  %v419_v49 = vmul.f32 %v418_v44, %v414_v32 }
  0xfd   : > { %v431_v48 = vadd.f32 0.112945676, %v430_v46  ;;  %v420_v52 = vadd.f32 0.05243302, %v419_v49 }
  0xff   : > { %v432_v50 = vmul.f32 %v431_v48, %v414_v32  ;;  %v421_v55 = vmul.f32 %v420_v52, %v414_v32 }
 0x101   : > { %v433_v51 = vadd.f32 0.4994258, %v432_v50  ;;  %v422_v56 = vadd.f32 0.18741608, %v421_v55 }
 0x103   : > { %v434_v53 = vmul.f32 %v433_v51, %v414_v32  ;;  %v423_v58 = vmul.f32 %v422_v56, %v414_v32 }
 0x105   : > { %v435_v54 = vadd.f32 1.0, %v434_v53  ;;  %v424_v62 = vadd.f32 1.1283791, %v423_v58 }
 0x107   : > { %819 = vrcp.f32 %v435_v54  ;;  %v447_v61 = vand.u32 2147483648, %v435_v54  ;;  %v445_v0 = vand.u32 2147483647, %v435_v54  ;;  %vm441_vm1 = vweird.f32 %v435_v54 }
 0x108   : > { %v425_v3 = vmul.f32 %v424_v62, %v412_v28 }
 0x109   : > { %v448_v2 = vor.u32 1.1754944e-38, %v447_v61  ;;  %vm446_vm3 = vcmp.eq.f32.partialorder %v445_v0, 8.507059e+37 }
 0x10d   : > { %v820_v57 = vpop.eup %819 }
 0x10e   : > { %v437_v59 = vmul.f32 %v820_v57, %v435_v54  ;;  %vm442_vm0 = vweird.f32 %v820_v57 }
 0x10f   : > { %vm443_vm2 = vmor %vm441_vm1, %vm442_vm0 }
 0x110   : > { %v438_v60 = vsub.f32 1.0, %v437_v59 }
 0x112   : > { %v439_v63 = vmul.f32 %v820_v57, %v438_v60 }
 0x114   : > { %v440_v1 = vadd.f32 %v820_v57, %v439_v63 }
 0x116   : > { %v444_v4 = vsel %vm443_vm2, %v820_v57, %v440_v1 }
 0x117   : > { %v449_v5 = vsel %vm446_vm3, %v448_v2, %v444_v4 }
 0x118   : > { %v450_v6 = vmul.f32 %v449_v5, %v425_v3 }
 0x11a   : > { %v689_v7 = vclamps-f32 %v450_v6, 1.0 }
 0x11c   : > { %v453_v9 = vadd.f32 1.0, %v689_v7 }
 0x11e   : > { %v454_v10 = vmul.f32 %v453_v9, %v411_v8 }
 0x120   : > { %487 = vmatmul.f32.vlgmr.msra.gmra.mxu1 %v454_v10 }
 0x199   : > { %494 = sbr.rel (%p690_p4) target bundleno = 415 (0x19f), region = 60 }
 0x19d   : > { %v488_v11 = vpop.f32.mrf.mxu1 }
 0x19e   : > { %495 = vst [vmem:[#allocation2] sm:$0xff] %v488_v11 }
 0x19f PF: > { %p691_p7 = scmp.le.s32.totalorder %s1056_s24, 0 }
 0x1a1   : > { %499 = sbr.rel (%p691_p7) target bundleno = 426 (0x1aa), region = 64 }
 0x1a6   : > { %v500_v12 = vld [vmem:[#allocation2] sm:$0xff] }
 0x1a7   : > { %v501_v13 = vadd.f32 %v500_v12, %v488_v11 }
 0x1a9   : > { %502 = vst [vmem:[#allocation2] sm:$0xff] %v501_v13 }
 0x1aa PF: > { %p692_p10 = scmp.ne.s32.totalorder %s1056_s24, 1 }
 0x1ab   : > { %s1469_s12 = sld [smem:[#allocation28_spill]] (!%p692_p10) }
 0x1ac   : > { %506 = sbr.rel (%p692_p10) target bundleno = 438 (0x1b6), region = 68 }
 0x1b1   : > { %v507_v14 = vld [vmem:[#allocation2] sm:$0xff] }
 0x1b2   : > { %v821_v15 = vld [vmem:[%s1469_s12] ss:$0 sm:$0xff] }
 0x1b3   : > { %v512_v16 = vadd.f32 %v821_v15, %v507_v14 }
 0x1b5   : > { %513 = vst [vmem:[%s368_s29] sm:$0xff] %v512_v16 }
 0x1b6 PF: > { %s1470_s14 = sld [smem:[#allocation19_spill]]  ;;  %s527_s0 = sshll.u32 %s368_s29, 4  ;;  %s528_s0 = int_to_ptr.vmem [resolvable:$true] %s527_s0 }
 0x1b7   : > { %s1471_s20 = sld [smem:[#allocation29_spill]]  ;;  %s515_s21 = scalar_lea.sflag [#allocation5], %s1297_s16 }
 0x1bc   : > { %s694_s11 = sshll.u32 %s1470_s14, 3 }
 0x1bd   : > { %s1472_s13 = smov %s1471_s20  ;;  %s525_s23 = scalar_lea.hbm %s1471_s20, %s694_s11 }
 0x1be   : > { %s529_s24 = sshll.u32 %s525_s23, 4  ;;  %s962_s9 = scalar_lea.hbm %s1472_s13, 16  ;;  %s530_s24 = int_to_ptr.hbm [resolvable:$true] %s529_s24 }
 0x1bf   : > { %s956_s17 = sshra.s32 %s530_s24, 4  ;;  %s957_s17 = int_to_ptr.hbm [resolvable:$true] %s956_s17 }
 0x1c0   : > { %s958_s6 = scalar_lea.hbm %s957_s17, 8  ;;  %p963_p0 = scmp.lt.s32.totalorder %s957_s17, %s1472_s13 }
 0x1c1   : > { %p959_p11 = scmp.ne.s32.totalorder %s957_s17, %s958_s6  ;;  %p964_p5 = scmp.lt.s32.totalorder %s962_s9, %s958_s6 }
 0x1c3   : > { %p960_p1 = pnand %p959_p11, %p1254_p12  ;;  %p965_p6 = por %p964_p5, %p963_p0 }
 0x1c5   : > { %p961_p3 = pneg %p960_p1 }
 0x1c7   : > { %p966_p8 = pnand %p965_p6, %p961_p3 }
 0x1c9   : > { %969 = shalt.err (!%p966_p8)
}
 0x1ca   : > { %706 = dma.vmem_to_hbm [thread:$0]  (%p1254_p12), %s528_s0, 128, %s530_s24, %s515_s21  }
 0x1cb PF: > { %s1473_s16 = sld [smem:[#allocation17_spill]]  ;;  %p726_p9 = scmp.ge.s32.totalorder %s1072_s28, 2 }
 0x1cd   : > { %p722_p2 = pnand %p726_p9, %p1263_p13 }
 0x1cf   : > { %p723_p4 = pneg %p722_p2 }
 0x1d1   : > { %s541_s1 = sand.u32 1, %s1473_s16  }
 0x1d2   : > { %s542_s29 = scalar_lea.sflag [#allocation5], %s541_s1 }
 0x1d3   : > { %1027 = dma.done.wait (%p723_p4), %s542_s29, 128  }
 0x1d4   : > { %1029 = vsyncadd (%p723_p4), %s542_s29, 4294967168  ;;  %s27_s28 = sadd.s32 1, %s1072_s28   ;;  %s1475_s10 = sld [smem:[#allocation16_spill]] }
 0x1d5   : > { %p24_p7 = scmp.ge.s32.totalorder %s27_s28, 6   ;;  %s1476_s20 = sld [smem:[#allocation23_spill]] }
 0x1d6   : > { %s1477_s5 = sld [smem:[#allocation18_spill]]  ;;  %s1482_s18 = smov %s1036_s19 }
 0x1d7   : > { %s1478_s23 = sld [smem:[#allocation24_spill]]  ;;  %s1484_s21 = smov %s1048_s22 }
 0x1d8   : > { %s1479_s25 = sld [smem:[#allocation20_spill]]  ;;  %s1486_s24 = smov %s1064_s26 }
 0x1d9   : > { %s1480_s12 = sld [smem:[#allocation21_spill]] }
 0x1da   : > { %s1481_s27 = sld [smem:[#allocation22_spill]]  ;;  %s1483_s19 = smov %s1475_s10 }
 0x1db   :  { %26 = sbr.rel (!%p24_p7) target bundleno = 18 (0x12), region = 134 }
 0x1dc   : > { %s1485_s22 = smov %s1477_s5 }
 0x1df   : > { %s1487_s26 = smov %s1480_s12 }
 0x1e0   :  { %548 = vsyncpa [#allocation4], 1 }
 0x1e1   :  { %550 = vsyncpa [#allocation4 + $0x1], 1 }
 0x1e2   :  { %551 = vsyncpa [#allocation7], 1 }
 0x1e3   :  { %553 = vsyncpa [#allocation7 + $0x1], 1 }
 0x1e4   :  { %554 = vsyncpa [#allocation10], 1 }
 0x1e5   :  { %556 = vsyncpa [#allocation10 + $0x1], 1 }
 0x1e6   :  { %557 = vsyncpa [#allocation5], 1 }
 0x1e7   :  { %559 = vsyncpa [#allocation5 + $0x1], 1 }

// kernel: tpu_custom_call.1
= control target key start
LH: loop header
LB: loop body
LE: loop exit
PB: predicated region body
PF: predicated region fallthrough
CT: control target
= control target key end

     0   :  { %s1423_s0 = inlined_call_operand.hbm [shape: f32[16,128], index: 0, kind: input, shape index: {}]   ;;  %s1424_s1 = inlined_call_operand.hbm [shape: f32[128,256], index: 1, kind: input, shape index: {}]   ;;  %s1425_s2 = inlined_call_operand.hbm [shape: f32[1,256], index: 2, kind: input, shape index: {}]   ;;  %s1426_s3 = inlined_call_operand.hbm [shape: f32[256,128], index: 3, kind: input, shape index: {}]   ;;  %s1427_s4 = inlined_call_operand.vmem [shape: f32[1,128], index: 4, kind: input, shape index: {}]   ;;  %s1428_s5 = inlined_call_operand.hbm [shape: f32[16,128], index: 5, kind: output, shape index: {}]  }
   0x1   :  { %1441 = sst [smem:[#allocation26_spill]] %s1423_s0 }
   0x2   :  { %1442 = sst [smem:[#allocation27_spill]] %s1424_s1 }
   0x3   :  { %1443 = sst [smem:[#allocation28_spill]] %s1427_s4 }
   0x4   :  { %1444 = sst [smem:[#allocation29_spill]] %s1428_s5 }
   0x5   :  { %10 = vsyncpa [#allocation4], 0 }
   0x6   :  { %12 = vsyncpa [#allocation4 + $0x1], 0 }
   0x7   :  { %13 = vsyncpa [#allocation7], 0 }
   0x8   :  { %15 = vsyncpa [#allocation7 + $0x1], 0 }
   0x9   :  { %16 = vsyncpa [#allocation10], 0 }
   0xa   :  { %18 = vsyncpa [#allocation10 + $0x1], 0 }
   0xb   :  { %19 = vsyncpa [#allocation5], 0 }
   0xc   :  { %21 = vsyncpa [#allocation5 + $0x1], 0  ;;  %s1107_s18 = smov 0   ;;  %s1109_s19 = smov 0  }
   0xd   :  { %s1111_s20 = smov 0   ;;  %s1113_s21 = smov 0  }
   0xe   :  { %s1115_s22 = smov 0   ;;  %s1117_s23 = smov 0  }
   0xf   :  { %s1119_s24 = smov 0   ;;  %s1121_s25 = smov 0  }
  0x10   :  { %s1123_s26 = smov 0   ;;  %s1125_s27 = smov 0  }
  0x11   :  { %s1127_s28 = smov 0  }
  0x12 LB: > { %1445 = sst [smem:[#allocation16_spill]] %s1040_s20  ;;  %p54_p0 = scmp.eq.s32.totalorder %s1072_s28, 0  ;;  %s1072_s28 = sphi %s1127_s28, %s27_s28   ;;  %s1068_s27 = sphi %s1125_s27, %s1481_s27   ;;  %s1064_s26 = sphi %s1123_s26, %s1487_s26   ;;  %s1060_s25 = sphi %s1121_s25, %s1479_s25   ;;  %s1056_s24 = sphi %s1119_s24, %s1486_s24   ;;  %s1052_s23 = sphi %s1117_s23, %s1478_s23   ;;  %s1048_s22 = sphi %s1115_s22, %s1485_s22   ;;  %s1044_s21 = sphi %s1113_s21, %s1484_s21   ;;  %s1040_s20 = sphi %s1111_s20, %s1476_s20   ;;  %s1036_s19 = sphi %s1109_s19, %s1483_s19   ;;  %s1032_s18 = sphi %s1107_s18, %s1482_s18  }
  0x13   : > { %1446 = sst [smem:[#allocation17_spill]] %s1044_s21  ;;  %p79_p1 = scmp.ne.s32.totalorder %s1040_s20, %s1036_s19 }
  0x14   : > { %1447 = sst [smem:[#allocation18_spill]] %s1052_s23  ;;  %p1434_p2 = scmp.lt.s32.totalorder %s1072_s28, 4 }
  0x15   : > { %1448 = sst [smem:[#allocation19_spill]] %s1060_s25  ;;  %s230_s30 = sand.u32 1, %s1072_s28  }
  0x16   : > { %1449 = sst [smem:[#allocation20_spill]] %s1068_s27  ;;  %p81_p3 = por %p79_p1, %p54_p0 }
  0x17   : > { %s1171_s6 = sand.u32 1, %s1040_s20   ;;  %s680_s7 = sshll.u32 %s1064_s26, 3 }
  0x18   : > { %s1429_s8 = sshll.u32 %s1171_s6, 7  ;;  %s1450_s1 = sld [smem:[#allocation27_spill]] }
  0x19   : > { %s234_s13 = scalar_lea.vmem [#allocation6], %s1429_s8  ;;  %p1182_p4 = pnand %p1434_p2, %p81_p3 }
  0x1a   : > { %s241_s14 = sshll.u32 %s234_s13, 4  ;;  %s1186_s16 = scalar_lea.sflag [#allocation7], %s230_s30  ;;  %s242_s14 = int_to_ptr.vmem [resolvable:$true] %s241_s14 }
  0x1b   : > { %s1074_s17 = smov 256   ;;  %s1431_s9 = smov 8  }
  0x1c   : > { %p684_p5 = scmp.ge.s32.totalorder %s1072_s28, 1  ;;  %p288_p6 = scmp.lt.s32.totalorder %s1072_s28, 5 }
  0x1d   : > { %s1200_s10 = sadd.s32 4294967295, %s1072_s28   ;;  %s36_s13 = sadd.s32 1, %s1064_s26 }
  0x1e   : > { %s238_s11 = scalar_lea.hbm %s1450_s1, %s680_s7  ;;  %s1430_s7 = smov 128  }
  0x1f   : > { %s239_s12 = sshll.u32 %s238_s11, 4  ;;  %p1195_p7 = pnand %p684_p5, %p288_p6  ;;  %s240_s12 = int_to_ptr.hbm [resolvable:$true] %s239_s12 }
  0x20   : > { %714 = dma.hbm_to_vmem [thread:$0]  (!%p1182_p4), %s240_s12, 2048, %s242_s14, %s1186_s16, %s1074_s17, %s1430_s7, %s1431_s9  }
  0x21   : > { %s674_s11 = sadd.s32 4294967294, %s1072_s28   ;;  %p37_p8 = scmp.ge.s32.totalorder %s36_s13, 2 }
  0x22   : > { %s39_s8 = sadd.s32 1, %s1068_s27  ;;  %s46_s12 = sadd.s32 1, %s1052_s23 }
  0x23   : > { %p53_p9 = scmp.ne.s32.totalorder %s1052_s23, %s1048_s22  ;;  %s1489_s13 = smov (%p37_p8, %s36_s13), 0 }
  0x24   : > { %1453 = sst [smem:[#allocation21_spill]] %s1489_s13  ;;  %s1491_s8 = smov (!%p37_p8, %s39_s8), %s1068_s27 }
  0x25   : > { %p1216_p10 = por %p54_p0, %p53_p9  ;;  %p59_p11 = scmp.ne.s32.totalorder %s1048_s22, %s1044_s21 }
  0x26   : > { %p41_p12 = scmp.ge.s32.totalorder %s1491_s8, 2  ;;  %p60_p13 = scmp.eq.s32.totalorder %s1200_s10, 0 }
  0x27   : > { %s69_s17 = ssub.s32 %s1064_s26, %s1489_s13  ;;  %p85_p1 = scmp.ne.s32.totalorder %s1036_s19, %s1032_s18 }
  0x28   : > { %s1493_s8 = smov (%p41_p12, %s1491_s8), 0  ;;  %p1232_p3 = por %p60_p13, %p59_p11 }
  0x29   : > { %1455 = sst [smem:[#allocation22_spill]] %s1493_s8  ;;  %p70_p0 = scmp.eq.s32.totalorder %s69_s17, 0 }
  0x2a   : > { %s43_s9 = ssub.s32 %s1068_s27, %s1493_s8  ;;  %p1238_p5 = por %p85_p1, %p60_p13 }
  0x2b   : > { %p44_p6 = scmp.eq.s32.totalorder %s43_s9, 0  ;;  %p182_p8 = scmp.eq.s32.totalorder %s1200_s10, 3 }
  0x2c   : > { %s1458_s1 = sadd.s32 1, %s1040_s20  ;;  %p188_p2 = scmp.eq.s32.totalorder %s674_s11, 3 }
  0x2d   : > { %s1246_s18 = scalar_select %p70_p0, %s1040_s20, %s1458_s1  }
  0x2e   : > { %s1249_s13 = scalar_select %p44_p6, %s1052_s23, %s46_s12  }
  0x2f   : > { %1459 = sst [smem:[#allocation23_spill]] %s1246_s18  ;;  %p1254_p12 = por %p182_p8, %p53_p9 }
  0x30   : > { %1460 = sst [smem:[#allocation24_spill]] %s1249_s13  ;;  %s211_s17 = sand.u32 1, %s1052_s23  }
  0x31   : > { %s678_s8 = sshll.u32 %s1068_s27, 3  ;;  %p1263_p13 = por %p188_p2, %p59_p11 }
  0x32   : > { %s677_s25 = sshll.u32 %s211_s17, 3  ;;  %s1464_s0 = sld [smem:[#allocation26_spill]] }
  0x33   : > { %s1462_s9 = scalar_select %p1263_p13, 1, 0 }
  0x34   : > { %s215_s11 = scalar_lea.vmem [#allocation3], %s677_s25  ;;  %p1465_p9 = scmp.lt.s32.totalorder %s1072_s28, 4 }
  0x35   : > { %1463 = sst [smem:[#allocation25_spill]] %s1462_s9  ;;  %s223_s23 = sshll.u32 %s215_s11, 4  ;;  %s224_s23 = int_to_ptr.vmem [resolvable:$true] %s223_s23 }
  0x36   : > { %p709_p2 = pnand %p1465_p9, %p1216_p10  ;;  %s257_s20 = scalar_lea.hbm %s1425_s2, %s1064_s26 }
  0x37   : > { %s259_s9 = sshll.u32 %s257_s20, 4  ;;  %s212_s4 = scalar_lea.sflag [#allocation4], %s211_s17  ;;  %s260_s9 = int_to_ptr.hbm [resolvable:$true] %s259_s9 }
  0x38   : > { %s219_s12 = scalar_lea.hbm %s1464_s0, %s678_s8  ;;  %s254_s8 = scalar_lea.vmem [#allocation8], %s1171_s6 }
  0x39   : > { %s221_s13 = sshll.u32 %s219_s12, 4  ;;  %s261_s1 = sshll.u32 %s254_s8, 4  ;;  %s222_s13 = int_to_ptr.hbm [resolvable:$true] %s221_s13  ;;  %s262_s1 = int_to_ptr.vmem [resolvable:$true] %s261_s1 }
  0x3a   : > { %711 = dma.hbm_to_vmem [thread:$0]  (!%p709_p2), %s222_s13, 128, %s224_s23, %s212_s4  }
  0x3b   : > { %717 = dma.hbm_to_vmem [thread:$0]  (!%p1182_p4), %s260_s9, 16, %s262_s1, %s1186_s16  }
  0x3c   : > { %s697_s25 = sshll.u32 %s1064_s26, 7  ;;  %s1466_s0 = sshll.u32 %s1171_s6, 7 }
  0x3d   : > { %s277_s11 = scalar_lea.hbm %s1426_s3, %s697_s25  ;;  %s272_s21 = scalar_lea.vmem [#allocation9], %s1466_s0 }
  0x3e   : > { %s280_s27 = sshll.u32 %s272_s21, 4  ;;  %s278_s18 = sshll.u32 %s277_s11, 4  ;;  %s281_s27 = int_to_ptr.vmem [resolvable:$true] %s280_s27  ;;  %s279_s18 = int_to_ptr.hbm [resolvable:$true] %s278_s18 }
  0x3f   : > { %s269_s20 = scalar_lea.sflag [#allocation10], %s1171_s6  ;;  %s1467_s23 = smov 8  }
  0x40   : > { %s1468_s13 = smov 128   ;;  %292 = sbr.rel (%p1195_p7) target bundleno = 459 (0x1cb), region = 40 }
  0x41   : > { %720 = dma.hbm_to_vmem [thread:$0]  (!%p1182_p4), %s279_s18, 2048, %s281_s27, %s269_s20, %s1468_s13, %s1468_s13, %s1467_s23  }
  0x42   : > { %s1297_s16 = sand.u32 (!%p1195_p7), 1, %s1048_s22  }
  0x43   : > { %s685_s0 = sshll.u32 (!%p1195_p7), %s1297_s16, 3  ;;  %s295_s21 = scalar_lea.sflag (!%p1195_p7), [#allocation4], %s1297_s16 }
  0x44   : > { %s1303_s17 = scalar_lea.vmem (!%p1195_p7), [#allocation3], %s685_s0 }
  0x45   : > { %1015 = dma.done.wait (%p1232_p3), %s295_s21, 128  }
  0x46   : > { %1017 = vsyncadd (%p1232_p3), %s295_s21, 4294967168  ;;  %s304_s6 = sand.u32 1, %s1200_s10   ;;  %s1311_s15 = sand.u32 1, %s1036_s19  }
  0x47   : > { %s686_s30 = sshll.u32 %s1311_s15, 7  ;;  %s305_s9 = scalar_lea.sflag [#allocation7], %s304_s6 }
  0x48   : > { %s1314_s4 = scalar_lea.vmem [#allocation6], %s686_s30 }
  0x49   : > { %1019 = dma.done.wait (%p1238_p5), %s305_s9, 2064  }
  0x4a   : > { %1021 = vsyncadd (%p1238_p5), %s305_s9, 4294965232  ;;  %s317_s7 = scalar_lea.vmem [#allocation8], %s1311_s15  ;;  %s324_s8 = scalar_lea.sflag [#allocation10], %s1311_s15 }
  0x4b   : > { %s1322_s1 = scalar_lea.vmem [#allocation9], %s686_s30 }
  0x4c   : > { %1023 = dma.done.wait (%p1238_p5), %s324_s8, 2048  }
  0x4d   : > { %1025 = vsyncadd (%p1238_p5), %s324_s8, 4294965248  ;;  %v386_v0 = vld [vmem:[%s1314_s4 + $0x78] sm:$0xff]  ;;  %v385_v1 = vld [vmem:[%s1314_s4 + $0x70] sm:$0xff]  ;;  %s368_s29 = scalar_lea.vmem [#allocation11], %s685_s0  ;;  %p690_p4 = scmp.ne.s32.totalorder %s1056_s24, 0 }
  0x4e   : > { %391 = vmatpush.msra.mxu0 %v386_v0  ;;  %v384_v2 = vld [vmem:[%s1314_s4 + $0x68] sm:$0xff]  ;;  %v383_v3 = vld [vmem:[%s1314_s4 + $0x60] sm:$0xff]  ;;  %v382_v4 = vld [vmem:[%s1314_s4 + $0x58] sm:$0xff] }
  0x4f   : > { %v381_v5 = vld [vmem:[%s1314_s4 + $0x50] sm:$0xff]  ;;  %v380_v6 = vld [vmem:[%s1314_s4 + $0x48] sm:$0xff]  ;;  %v379_v7 = vld [vmem:[%s1314_s4 + $0x40] sm:$0xff] }
  0x50   : > { %392 = vmatpush.msra.mxu0 %v385_v1  ;;  %v378_v8 = vld [vmem:[%s1314_s4 + $0x38] sm:$0xff]  ;;  %v377_v9 = vld [vmem:[%s1314_s4 + $0x30] sm:$0xff]  ;;  %v376_v10 = vld [vmem:[%s1314_s4 + $0x28] sm:$0xff] }
  0x51   : > { %v375_v11 = vld [vmem:[%s1314_s4 + $0x20] sm:$0xff]  ;;  %v374_v12 = vld [vmem:[%s1314_s4 + $0x18] sm:$0xff]  ;;  %v373_v13 = vld [vmem:[%s1314_s4 + $0x10] sm:$0xff] }
  0x52   : > { %393 = vmatpush.msra.mxu0 %v384_v2  ;;  %v372_v14 = vld [vmem:[%s1314_s4 + $0x8] sm:$0xff]  ;;  %v371_v15 = vld [vmem:[%s1314_s4] sm:$0xff]  ;;  %v370_v16 = vld [vmem:[%s1303_s17] sm:$0xff] }
  0x53   : > { %v470_v17 = vld [vmem:[%s1322_s1 + $0x78] sm:$0xff]  ;;  %v469_v18 = vld [vmem:[%s1322_s1 + $0x70] sm:$0xff]  ;;  %v468_v19 = vld [vmem:[%s1322_s1 + $0x68] sm:$0xff] }
  0x54   : > { %394 = vmatpush.msra.mxu0 %v383_v3  ;;  %471 = vmatpush.msra.mxu1 %v470_v17  ;;  %v467_v20 = vld [vmem:[%s1322_s1 + $0x60] sm:$0xff]  ;;  %v466_v22 = vld [vmem:[%s1322_s1 + $0x58] sm:$0xff]  ;;  %v465_v23 = vld [vmem:[%s1322_s1 + $0x50] sm:$0xff] }
  0x55   : > { %v818_v21 = vld [vmem:[%s317_s7] ss:$0 sm:$0xff]  ;;  %v464_v25 = vld [vmem:[%s1322_s1 + $0x48] sm:$0xff]  ;;  %v462_v29 = vld [vmem:[%s1322_s1 + $0x38] sm:$0xff] }
  0x56   : > { %395 = vmatpush.msra.mxu0 %v382_v4  ;;  %472 = vmatpush.msra.mxu1 %v469_v18  ;;  %v463_v27 = vld [vmem:[%s1322_s1 + $0x40] sm:$0xff]  ;;  %v461_v31 = vld [vmem:[%s1322_s1 + $0x30] sm:$0xff]  ;;  %v460_v33 = vld [vmem:[%s1322_s1 + $0x28] sm:$0xff] }
  0x57   : > { %v459_v36 = vld [vmem:[%s1322_s1 + $0x20] sm:$0xff]  ;;  %v458_v39 = vld [vmem:[%s1322_s1 + $0x18] sm:$0xff]  ;;  %v457_v42 = vld [vmem:[%s1322_s1 + $0x10] sm:$0xff] }
  0x58   : > { %396 = vmatpush.msra.mxu0 %v381_v5  ;;  %473 = vmatpush.msra.mxu1 %v468_v19  ;;  %v456_v45 = vld [vmem:[%s1322_s1 + $0x8] sm:$0xff]  ;;  %v455_v47 = vld [vmem:[%s1322_s1] sm:$0xff] }
  0x5a   : > { %397 = vmatpush.msra.mxu0 %v380_v6  ;;  %474 = vmatpush.msra.mxu1 %v467_v20 }
  0x5c   : > { %398 = vmatpush.msra.mxu0 %v379_v7  ;;  %475 = vmatpush.msra.mxu1 %v466_v22 }
  0x5e   : > { %399 = vmatpush.msra.mxu0 %v378_v8  ;;  %476 = vmatpush.msra.mxu1 %v465_v23 }
  0x60   : > { %400 = vmatpush.msra.mxu0 %v377_v9  ;;  %477 = vmatpush.msra.mxu1 %v464_v25 }
  0x62   : > { %401 = vmatpush.msra.mxu0 %v376_v10  ;;  %478 = vmatpush.msra.mxu1 %v463_v27 }
  0x64   : > { %402 = vmatpush.msra.mxu0 %v375_v11  ;;  %479 = vmatpush.msra.mxu1 %v462_v29 }
  0x66   : > { %403 = vmatpush.msra.mxu0 %v374_v12  ;;  %480 = vmatpush.msra.mxu1 %v461_v31 }
  0x68   : > { %404 = vmatpush.msra.mxu0 %v373_v13  ;;  %481 = vmatpush.msra.mxu1 %v460_v33 }
  0x6a   : > { %405 = vmatpush.msra.mxu0 %v372_v14  ;;  %482 = vmatpush.msra.mxu1 %v459_v36 }
  0x6c   : > { %406 = vmatpush.msra.mxu0 %v371_v15  ;;  %483 = vmatpush.msra.mxu1 %v458_v39 }
  0x6d   : > { %407 = vmatmul.f32.vlgmr.msra.gmra.mxu0 %v370_v16 }
  0x6e   : > { %484 = vmatpush.msra.mxu1 %v457_v42 }
  0x70   : > { %485 = vmatpush.msra.mxu1 %v456_v45 }
  0x72   : > { %486 = vmatpush.msra.mxu1 %v455_v47 }
  0xea   : > { %v408_v24 = vpop.f32.mrf.mxu0 }
  0xeb   : > { %v409_v26 = vadd.f32 %v818_v21, %v408_v24 }
  0xed   : > { %v412_v28 = vmul.f32 0.70710677, %v409_v26  ;;  %v411_v8 = vmul.f32 0.5, %v409_v26 }
  0xef   : > { %v413_v30 = vmul.f32 %v412_v28, %v412_v28 }
  0xf1   : > { %v414_v32 = vmin.f32 %v413_v30, 16.0 }
  0xf3   : > { %v415_v34 = vmul.f32 2.1237322e-06, %v414_v32  ;;  %v426_v35 = vmul.f32 3.8918573e-05, %v414_v32 }
  0xf5   : > { %v416_v37 = vadd.f32 0.00028619796, %v415_v34  ;;  %v427_v38 = vadd.f32 0.001143296, %v426_v35 }
  0xf7   : > { %v417_v40 = vmul.f32 %v416_v37, %v414_v32  ;;  %v428_v41 = vmul.f32 %v427_v38, %v414_v32 }
  0xf9   : > { %v429_v43 = vadd.f32 0.014752088, %v428_v41  ;;  %v418_v44 = vadd.f32 0.0036580483, %v417_v40 }
  0xfb   : > { %v430_v46 = vmul.f32 %v429_v43, %v414_v32  ;;  %v419_v49 = vmul.f32 %v418_v44, %v414_v32 }
  0xfd   : > { %v431_v48 = vadd.f32 0.112945676, %v430_v46  ;;  %v420_v52 = vadd.f32 0.05243302, %v419_v49 }
  0xff   : > { %v432_v50 = vmul.f32 %v431_v48, %v414_v32  ;;  %v421_v55 = vmul.f32 %v420_v52, %v414_v32 }
 0x101   : > { %v433_v51 = vadd.f32 0.4994258, %v432_v50  ;;  %v422_v56 = vadd.f32 0.18741608, %v421_v55 }
 0x103   : > { %v434_v53 = vmul.f32 %v433_v51, %v414_v32  ;;  %v423_v58 = vmul.f32 %v422_v56, %v414_v32 }
 0x105   : > { %v435_v54 = vadd.f32 1.0, %v434_v53  ;;  %v424_v62 = vadd.f32 1.1283791, %v423_v58 }
 0x107   : > { %819 = vrcp.f32 %v435_v54  ;;  %v447_v61 = vand.u32 2147483648, %v435_v54  ;;  %v445_v0 = vand.u32 2147483647, %v435_v54  ;;  %vm441_vm1 = vweird.f32 %v435_v54 }
 0x108   : > { %v425_v3 = vmul.f32 %v424_v62, %v412_v28 }
 0x109   : > { %v448_v2 = vor.u32 1.1754944e-38, %v447_v61  ;;  %vm446_vm3 = vcmp.eq.f32.partialorder %v445_v0, 8.507059e+37 }
 0x10d   : > { %v820_v57 = vpop.eup %819 }
 0x10e   : > { %v437_v59 = vmul.f32 %v820_v57, %v435_v54  ;;  %vm442_vm0 = vweird.f32 %v820_v57 }
 0x10f   : > { %vm443_vm2 = vmor %vm441_vm1, %vm442_vm0 }
 0x110   : > { %v438_v60 = vsub.f32 1.0, %v437_v59 }
 0x112   : > { %v439_v63 = vmul.f32 %v820_v57, %v438_v60 }
 0x114   : > { %v440_v1 = vadd.f32 %v820_v57, %v439_v63 }
 0x116   : > { %v444_v4 = vsel %vm443_vm2, %v820_v57, %v440_v1 }
 0x117   : > { %v449_v5 = vsel %vm446_vm3, %v448_v2, %v444_v4 }
 0x118   : > { %v450_v6 = vmul.f32 %v449_v5, %v425_v3 }
 0x11a   : > { %v689_v7 = vclamps-f32 %v450_v6, 1.0 }
 0x11c   : > { %v453_v9 = vadd.f32 1.0, %v689_v7 }
 0x11e   : > { %v454_v10 = vmul.f32 %v453_v9, %v411_v8 }
 0x120   : > { %487 = vmatmul.f32.vlgmr.msra.gmra.mxu1 %v454_v10 }
 0x199   : > { %494 = sbr.rel (%p690_p4) target bundleno = 415 (0x19f), region = 60 }
 0x19d   : > { %v488_v11 = vpop.f32.mrf.mxu1 }
 0x19e   : > { %495 = vst [vmem:[#allocation2] sm:$0xff] %v488_v11 }
 0x19f PF: > { %p691_p7 = scmp.le.s32.totalorder %s1056_s24, 0 }
 0x1a1   : > { %499 = sbr.rel (%p691_p7) target bundleno = 426 (0x1aa), region = 64 }
 0x1a6   : > { %v500_v12 = vld [vmem:[#allocation2] sm:$0xff] }
 0x1a7   : > { %v501_v13 = vadd.f32 %v500_v12, %v488_v11 }
 0x1a9   : > { %502 = vst [vmem:[#allocation2] sm:$0xff] %v501_v13 }
 0x1aa PF: > { %p692_p10 = scmp.ne.s32.totalorder %s1056_s24, 1 }
 0x1ab   : > { %s1469_s12 = sld [smem:[#allocation28_spill]] (!%p692_p10) }
 0x1ac   : > { %506 = sbr.rel (%p692_p10) target bundleno = 438 (0x1b6), region = 68 }
 0x1b1   : > { %v507_v14 = vld [vmem:[#allocation2] sm:$0xff] }
 0x1b2   : > { %v821_v15 = vld [vmem:[%s1469_s12] ss:$0 sm:$0xff] }
 0x1b3   : > { %v512_v16 = vadd.f32 %v821_v15, %v507_v14 }
 0x1b5   : > { %513 = vst [vmem:[%s368_s29] sm:$0xff] %v512_v16 }
 0x1b6 PF: > { %s1470_s14 = sld [smem:[#allocation19_spill]]  ;;  %s527_s0 = sshll.u32 %s368_s29, 4  ;;  %s528_s0 = int_to_ptr.vmem [resolvable:$true] %s527_s0 }
 0x1b7   : > { %s1471_s20 = sld [smem:[#allocation29_spill]]  ;;  %s515_s21 = scalar_lea.sflag [#allocation5], %s1297_s16 }
 0x1bc   : > { %s694_s11 = sshll.u32 %s1470_s14, 3 }
 0x1bd   : > { %s1472_s13 = smov %s1471_s20  ;;  %s525_s23 = scalar_lea.hbm %s1471_s20, %s694_s11 }
 0x1be   : > { %s529_s24 = sshll.u32 %s525_s23, 4  ;;  %s962_s9 = scalar_lea.hbm %s1472_s13, 16  ;;  %s530_s24 = int_to_ptr.hbm [resolvable:$true] %s529_s24 }
 0x1bf   : > { %s956_s17 = sshra.s32 %s530_s24, 4  ;;  %s957_s17 = int_to_ptr.hbm [resolvable:$true] %s956_s17 }
 0x1c0   : > { %s958_s6 = scalar_lea.hbm %s957_s17, 8  ;;  %p963_p0 = scmp.lt.s32.totalorder %s957_s17, %s1472_s13 }
 0x1c1   : > { %p959_p11 = scmp.ne.s32.totalorder %s957_s17, %s958_s6  ;;  %p964_p5 = scmp.lt.s32.totalorder %s962_s9, %s958_s6 }
 0x1c3   : > { %p960_p1 = pnand %p959_p11, %p1254_p12  ;;  %p965_p6 = por %p964_p5, %p963_p0 }
 0x1c5   : > { %p961_p3 = pneg %p960_p1 }
 0x1c7   : > { %p966_p8 = pnand %p965_p6, %p961_p3 }
 0x1c9   : > { %969 = shalt.err (!%p966_p8)
}
 0x1ca   : > { %706 = dma.vmem_to_hbm [thread:$0]  (%p1254_p12), %s528_s0, 128, %s530_s24, %s515_s21  }
 0x1cb PF: > { %s1473_s16 = sld [smem:[#allocation17_spill]]  ;;  %p726_p9 = scmp.ge.s32.totalorder %s1072_s28, 2 }
 0x1cd   : > { %p722_p2 = pnand %p726_p9, %p1263_p13 }
 0x1cf   : > { %p723_p4 = pneg %p722_p2 }
 0x1d1   : > { %s541_s1 = sand.u32 1, %s1473_s16  }
 0x1d2   : > { %s542_s29 = scalar_lea.sflag [#allocation5], %s541_s1 }
 0x1d3   : > { %1027 = dma.done.wait (%p723_p4), %s542_s29, 128  }
 0x1d4   : > { %1029 = vsyncadd (%p723_p4), %s542_s29, 4294967168  ;;  %s27_s28 = sadd.s32 1, %s1072_s28   ;;  %s1475_s10 = sld [smem:[#allocation16_spill]] }
 0x1d5   : > { %p24_p7 = scmp.ge.s32.totalorder %s27_s28, 6   ;;  %s1476_s20 = sld [smem:[#allocation23_spill]] }
 0x1d6   : > { %s1477_s5 = sld [smem:[#allocation18_spill]]  ;;  %s1482_s18 = smov %s1036_s19 }
 0x1d7   : > { %s1478_s23 = sld [smem:[#allocation24_spill]]  ;;  %s1484_s21 = smov %s1048_s22 }
 0x1d8   : > { %s1479_s25 = sld [smem:[#allocation20_spill]]  ;;  %s1486_s24 = smov %s1064_s26 }
 0x1d9   : > { %s1480_s12 = sld [smem:[#allocation21_spill]] }
 0x1da   : > { %s1481_s27 = sld [smem:[#allocation22_spill]]  ;;  %s1483_s19 = smov %s1475_s10 }
 0x1db   :  { %26 = sbr.rel (!%p24_p7) target bundleno = 18 (0x12), region = 134 }
 0x1dc   : > { %s1485_s22 = smov %s1477_s5 }
 0x1df   : > { %s1487_s26 = smov %s1480_s12 }
 0x1e0   :  { %548 = vsyncpa [#allocation4], 1 }
 0x1e1   :  { %550 = vsyncpa [#allocation4 + $0x1], 1 }
 0x1e2   :  { %551 = vsyncpa [#allocation7], 1 }
 0x1e3   :  { %553 = vsyncpa [#allocation7 + $0x1], 1 }
 0x1e4   :  { %554 = vsyncpa [#allocation10], 1 }
 0x1e5   :  { %556 = vsyncpa [#allocation10 + $0x1], 1 }
 0x1e6   :  { %557 = vsyncpa [#allocation5], 1 }
 0x1e7   :  { %559 = vsyncpa [#allocation5 + $0x1], 1 }

</bundles_post_ra>
